<compile_context>
chip_gen: v5e
topology: v5e:2x2
jax: 0.10.0
libtpu: 0.0.40
codegen_flags: <defaults>
</compile_context>

<pallas_src>
import functools

import jax
import jax.numpy as jnp
import numpy as np
from jax.experimental import pallas as pl
from jax.experimental.pallas import tpu as pltpu


def _round_up(n, m):
    return ((n + m - 1) // m) * m


def _pack_gates(w, H, G):
    """(in_dim, 4H) in PyTorch gate order [i,f,g,o] -> (in_dim, G) packed [i,f,o,g].

    Gates are packed contiguously (no per-gate 128-lane padding), then the whole 4H block
    is padded once up to G=round_up(4H,128).  The [i,f,o,g] order lets the kernel apply one
    contiguous sigmoid over the first 3H lanes and one tanh over the last H lanes.
    """
    in_dim = w.shape[0]
    w4 = w.reshape(in_dim, 4, H)
    w4 = w4[:, jnp.array([0, 1, 3, 2]), :]          # [i, f, o, g]
    packed = w4.reshape(in_dim, 4 * H)
    return jnp.pad(packed, ((0, 0), (0, G - 4 * H)))


def _lstm_regime_kernel(x_ref, wih_ref, whh_ref, b_ref, wfc_ref, bfc_ref,
                        out_ref, xg_sc, h_sc, c_sc,
                        *, seq_len, time_chunk, batch_p, hidden, mxu_dtype):
    T, Tc, Bp, H = seq_len, time_chunk, batch_p, hidden
    k = pl.program_id(0)

    @pl.when(k == 0)
    def _init():
        h_sc[...] = jnp.zeros_like(h_sc)
        c_sc[...] = jnp.zeros_like(c_sc)

    # Input projection for THIS time chunk only (bias folded in once):
    #   (Tc*Bp, F) @ (F, G) -> (Tc*Bp, G).  The next chunk's x DMA overlaps this + the loop.
    xg_sc[...] = (jnp.dot(x_ref[...].astype(mxu_dtype), wih_ref[...],
                          preferred_element_type=jnp.float32)
                  + b_ref[...])

    needs_mask = (T % Tc) != 0            # resolved at trace time
    chunk_start = k * Tc

    def step(t, carry):
        h_prev, c_prev = carry            # (Bp, H) f32, vreg-resident
        row = pl.multiple_of(t * Bp, Bp)
        # Single fused recurrent matmul per step + precomputed x-term.
        gates = xg_sc[pl.ds(row, Bp), :] + jnp.dot(
            h_prev.astype(mxu_dtype), whh_ref[...],
            preferred_element_type=jnp.float32)          # (Bp, G)

        # Packed gate order [i, f, o, g]: one wide sigmoid + one tanh per step.
        sig = jax.nn.sigmoid(gates[:, 0:3 * H])
        i_g = sig[:, 0 * H:1 * H]
        f_g = sig[:, 1 * H:2 * H]
        o_g = sig[:, 2 * H:3 * H]
        g_g = jnp.tanh(gates[:, 3 * H:4 * H])

        c_new = f_g * c_prev + i_g * g_g
        h_new = o_g * jnp.tanh(c_new)
        if needs_mask:                    # only traced when T is not a multiple of Tc
            valid = (chunk_start + t) < T
            h_new = jnp.where(valid, h_new, h_prev)
            c_new = jnp.where(valid, c_new, c_prev)
        return h_new, c_new

    h_fin, c_fin = jax.lax.fori_loop(0, Tc, step, (h_sc[...], c_sc[...]),
                                     unroll=min(Tc, 8))
    h_sc[...] = h_fin
    c_sc[...] = c_fin

    @pl.when(k == pl.num_programs(0) - 1)
    def _finalize():
        # Dropout is identity in eval; FC(H,1) + sigmoid as a lane reduction
        # (avoids a degenerate N=1 MXU matmul).  fc bias comes from SMEM.
        logit = jnp.sum(h_fin * wfc_ref[...], axis=-1, keepdims=True) + bfc_ref[0]
        out_ref[...] = jax.nn.sigmoid(logit)


def lstm_regime_forward(x_btf, params, *, time_chunk=8, mxu_dtype=jnp.float32):
    """x_btf: (B, T, F) float32, batch_first like the PyTorch module."""
    B, T, F = x_btf.shape
    H = params["whh_t"].shape[0]
    Bp = _round_up(B, 8)              # sublane granularity
    G = _round_up(4 * H, 128)         # packed gate width (one vreg for H<=32)
    Tc = min(time_chunk, T)
    T_pad = _round_up(T, Tc)
    num_chunks = T_pad // Tc

    # Packed / reordered parameters (PyTorch [i,f,g,o] -> kernel [i,f,o,g]).
    wih_p = _pack_gates(params["wih_t"], H, G).astype(mxu_dtype)               # (F, G)
    whh_p = _pack_gates(params["whh_t"], H, G).astype(mxu_dtype)               # (H, G)
    bias_p = _pack_gates((params["b_ih"] + params["b_hh"]).reshape(1, 4 * H),
                         H, G)                                                 # (1, G) f32
    wfc = params["w_fc"].astype(jnp.float32)                                   # (1, H)
    bfc = params["b_fc"].reshape(1).astype(jnp.float32)                        # (1,) -> SMEM

    # Time-major, batch/time padded, flattened: each grid step pulls exactly one
    # (Tc*Bp, F) chunk into VMEM, so x's VMEM footprint is bounded by the chunk.
    x_tbf = jnp.transpose(x_btf, (1, 0, 2))                                    # (T, B, F)
    x_pad = jnp.pad(x_tbf, ((0, T_pad - T), (0, Bp - B), (0, 0)))              # (T_pad, Bp, F)
    x_flat = x_pad.reshape(T_pad * Bp, F).astype(mxu_dtype)

    kernel = functools.partial(_lstm_regime_kernel, seq_len=T, time_chunk=Tc,
                               batch_p=Bp, hidden=H, mxu_dtype=mxu_dtype)

    out = pl.pallas_call(
        kernel,
        out_shape=jax.ShapeDtypeStruct((Bp, 1), jnp.float32),
        grid_spec=pltpu.PrefetchScalarGridSpec(
            num_scalar_prefetch=0,
            grid=(num_chunks,),
            in_specs=[
                pl.BlockSpec((Tc * Bp, F), lambda k: (k, 0)),        # x chunk (pipelined)
                pl.BlockSpec((F, G), lambda k: (0, 0)),              # W_ih^T packed
                pl.BlockSpec((H, G), lambda k: (0, 0)),              # W_hh^T packed
                pl.BlockSpec((1, G), lambda k: (0, 0)),              # fused LSTM bias
                pl.BlockSpec((1, H), lambda k: (0, 0)),              # fc weight row
                pl.BlockSpec(memory_space=pltpu.MemorySpace.SMEM),   # fc bias scalar
            ],
            out_specs=pl.BlockSpec((Bp, 1), lambda k: (0, 0)),
            scratch_shapes=[
                pltpu.VMEM((Tc * Bp, G), jnp.float32),   # xg chunk (x @ W_ih + b)
                pltpu.VMEM((Bp, H), jnp.float32),        # h carry (persists across chunks)
                pltpu.VMEM((Bp, H), jnp.float32),        # c carry (persists across chunks)
            ],
        ),
        compiler_params=pltpu.CompilerParams(
            dimension_semantics=("arbitrary",),          # time recurrence is sequential
            vmem_limit_bytes=32 * 1024 * 1024),
    )(x_flat, wih_p, whh_p, bias_p, wfc, bfc)

    return out[:B, 0]   # .squeeze(1)


def reference_forward(x_btf, params):
    """Pure-JAX reference mirroring PyTorch nn.LSTM + Linear + sigmoid."""
    B, T, F = x_btf.shape
    H = params["whh_t"].shape[0]
    bias = params["b_ih"] + params["b_hh"]

    def step(carry, x_t):
        h, c = carry
        gates = x_t @ params["wih_t"] + h @ params["whh_t"] + bias
        i = jax.nn.sigmoid(gates[:, 0 * H:1 * H])
        f = jax.nn.sigmoid(gates[:, 1 * H:2 * H])
        g = jnp.tanh(gates[:, 2 * H:3 * H])
        o = jax.nn.sigmoid(gates[:, 3 * H:4 * H])
        c_new = f * c + i * g
        h_new = o * jnp.tanh(c_new)
        return (h_new, c_new), None

    h0 = jnp.zeros((B, H), jnp.float32)
    c0 = jnp.zeros((B, H), jnp.float32)
    (h_last, _), _ = jax.lax.scan(step, (h0, c0), jnp.transpose(x_btf, (1, 0, 2)))
    logit = h_last @ params["w_fc"].T + params["b_fc"]
    return jax.nn.sigmoid(logit)[:, 0]


def init_params(key, n_features, hidden_dim):
    ks = jax.random.split(key, 6)
    scale = 1.0 / np.sqrt(hidden_dim)
    return {
        # Stored pre-transposed for the kernel: (F, 4H) and (H, 4H), PyTorch gate order [i,f,g,o].
        "wih_t": jax.random.uniform(ks[0], (n_features, 4 * hidden_dim),
                                    jnp.float32, -scale, scale),
        "whh_t": jax.random.uniform(ks[1], (hidden_dim, 4 * hidden_dim),
                                    jnp.float32, -scale, scale),
        "b_ih": jax.random.uniform(ks[2], (4 * hidden_dim,), jnp.float32, -scale, scale),
        "b_hh": jax.random.uniform(ks[3], (4 * hidden_dim,), jnp.float32, -scale, scale),
        "w_fc": jax.random.uniform(ks[4], (1, hidden_dim), jnp.float32, -scale, scale),
        "b_fc": jax.random.uniform(ks[5], (1,), jnp.float32, -scale, scale),
    }


if __name__ == "__main__":
    B, T, F, H = 2, 8, 4, 32
    key = jax.random.PRNGKey(0)
    kx, kp = jax.random.split(key)
    x = jax.random.normal(kx, (B, T, F), jnp.float32)
    params = init_params(kp, F, H)

    # time_chunk=4 -> grid=(2,): exercises the chunked / pipelined path on the toy shape.
    out = lstm_regime_forward(x, params, time_chunk=4, mxu_dtype=jnp.float32)
    jax.block_until_ready(out)

    ref = reference_forward(x, params)
    np.testing.assert_allclose(np.asarray(out), np.asarray(ref), rtol=1e-5, atol=1e-5)

    # NOTE: pass mxu_dtype=jnp.bfloat16 on v6e/v7x for ~2-3x on the matmuls (needs a
    # looser tolerance than the 1e-5 f32 check above).
    print("KERNEL_OK")
</pallas_src>

<mosaic_0001>
module attributes {stable_mosaic.version = 11 : i64} {
  func.func @_lstm_regime_kernel(%arg0: i32, %arg1: memref<32x4xf32, #tpu.memory_space<vmem>>, %arg2: memref<4x128xf32, #tpu.memory_space<vmem>>, %arg3: memref<32x128xf32, #tpu.memory_space<vmem>>, %arg4: memref<1x128xf32, #tpu.memory_space<vmem>>, %arg5: memref<1x32xf32, #tpu.memory_space<vmem>>, %arg6: memref<1xf32, #tpu.memory_space<smem>>, %arg7: memref<8x1xf32, #tpu.memory_space<vmem>>, %arg8: memref<32x128xf32, #tpu.memory_space<vmem>>, %arg9: memref<8x32xf32, #tpu.memory_space<vmem>>, %arg10: memref<8x32xf32, #tpu.memory_space<vmem>>) attributes {dimension_semantics = [#tpu.dimension_semantics<arbitrary>], iteration_bounds = array<i64: 2>, scalar_prefetch = 0 : i64, scratch_operands = 3 : i64, tpu.core_type = #tpu.core_type<tc>, window_params = [{transform_indices = @transform_0, window_bounds = array<i64: 32, 4>}, {pipeline_mode = #tpu.pipeline_mode<synchronous>, transform_indices = @transform_1, window_bounds = array<i64: 4, 128>}, {pipeline_mode = #tpu.pipeline_mode<synchronous>, transform_indices = @transform_2, window_bounds = array<i64: 32, 128>}, {pipeline_mode = #tpu.pipeline_mode<synchronous>, transform_indices = @transform_3, window_bounds = array<i64: 1, 128>}, {pipeline_mode = #tpu.pipeline_mode<synchronous>, transform_indices = @transform_4, window_bounds = array<i64: 1, 32>}, {transform_indices = @transform_5, window_bounds = array<i64: 1>}, {pipeline_mode = #tpu.pipeline_mode<synchronous>, transform_indices = @transform_6, window_bounds = array<i64: 8, 1>}]} {
    %c0_i32 = arith.constant 0 : i32
    %0 = arith.cmpi eq, %arg0, %c0_i32 : i32
    %1 = arith.extui %0 : i1 to i32
    %c0_i32_0 = arith.constant 0 : i32
    %2 = arith.cmpi ne, %1, %c0_i32_0 : i32
    scf.if %2 {
      %cst_42 = arith.constant 0.000000e+00 : f32
      %109 = vector.broadcast %cst_42 : f32 to vector<8x32xf32>
      %c0_43 = arith.constant 0 : index
      %c0_44 = arith.constant 0 : index
      %110 = vector.load %arg9[%c0_43, %c0_44] : memref<8x32xf32, #tpu.memory_space<vmem>>, vector<8x32xf32>
      tpu.vector_store %arg9[%c0_43, %c0_44], %109 {strides = array<i32>} : memref<8x32xf32, #tpu.memory_space<vmem>>, vector<8x32xf32>,
      %cst_45 = arith.constant 0.000000e+00 : f32
      %111 = vector.broadcast %cst_45 : f32 to vector<8x32xf32>
      %c0_46 = arith.constant 0 : index
      %c0_47 = arith.constant 0 : index
      %112 = vector.load %arg10[%c0_46, %c0_47] : memref<8x32xf32, #tpu.memory_space<vmem>>, vector<8x32xf32>
      tpu.vector_store %arg10[%c0_46, %c0_47], %111 {strides = array<i32>} : memref<8x32xf32, #tpu.memory_space<vmem>>, vector<8x32xf32>,
    } else {
    }
    %c0 = arith.constant 0 : index
    %c0_1 = arith.constant 0 : index
    %3 = vector.load %arg1[%c0, %c0_1] : memref<32x4xf32, #tpu.memory_space<vmem>>, vector<32x4xf32>
    %c0_2 = arith.constant 0 : index
    %c0_3 = arith.constant 0 : index
    %4 = vector.load %arg2[%c0_2, %c0_3] : memref<4x128xf32, #tpu.memory_space<vmem>>, vector<4x128xf32>
    %cst = arith.constant dense<0.000000e+00> : vector<32x128xf32>
    %5 = tpu.matmul %3, %4, %cst {dimension_numbers = #tpu.dot_dimension_numbers<[1], [0], [0], [1], [0, 0, 1, 1], [], []>} : vector<32x4xf32>, vector<4x128xf32>, vector<32x128xf32> -> vector<32x128xf32>
    %c0_4 = arith.constant 0 : index
    %c0_5 = arith.constant 0 : index
    %6 = vector.load %arg4[%c0_4, %c0_5] : memref<1x128xf32, #tpu.memory_space<vmem>>, vector<1x128xf32>
    %7 = vector.broadcast %6 : vector<1x128xf32> to vector<32x128xf32>
    %8 = arith.addf %5, %7 : vector<32x128xf32>
    %c0_6 = arith.constant 0 : index
    %c0_7 = arith.constant 0 : index
    %9 = vector.load %arg8[%c0_6, %c0_7] : memref<32x128xf32, #tpu.memory_space<vmem>>, vector<32x128xf32>
    tpu.vector_store %arg8[%c0_6, %c0_7], %8 {strides = array<i32>} : memref<32x128xf32, #tpu.memory_space<vmem>>, vector<32x128xf32>,
    %c0_8 = arith.constant 0 : index
    %c0_9 = arith.constant 0 : index
    %10 = vector.load %arg9[%c0_8, %c0_9] : memref<8x32xf32, #tpu.memory_space<vmem>>, vector<8x32xf32>
    %c0_10 = arith.constant 0 : index
    %c0_11 = arith.constant 0 : index
    %11 = vector.load %arg10[%c0_10, %c0_11] : memref<8x32xf32, #tpu.memory_space<vmem>>, vector<8x32xf32>
    %c0_i32_12 = arith.constant 0 : i32
    %c8_i32 = arith.constant 8 : i32
    %12 = arith.muli %c0_i32_12, %c8_i32 : i32
    %13 = tpu.assume_multiple %12, 8 : i32
    %14 = arith.index_cast %13 : i32 to index
    %c0_13 = arith.constant 0 : index
    %15 = vector.load %arg8[%14, %c0_13] : memref<32x128xf32, #tpu.memory_space<vmem>>, vector<8x128xf32>
    %c0_14 = arith.constant 0 : index
    %c0_15 = arith.constant 0 : index
    %16 = vector.load %arg3[%c0_14, %c0_15] : memref<32x128xf32, #tpu.memory_space<vmem>>, vector<32x128xf32>
    %cst_16 = arith.constant dense<0.000000e+00> : vector<8x128xf32>
    %17 = tpu.matmul %10, %16, %cst_16 {dimension_numbers = #tpu.dot_dimension_numbers<[1], [0], [0], [1], [0, 0, 1, 1], [], []>} : vector<8x32xf32>, vector<32x128xf32>, vector<8x128xf32> -> vector<8x128xf32>
    %18 = arith.addf %15, %17 : vector<8x128xf32>
    %19 = vector.extract_strided_slice %18 {offsets = [0, 0], sizes = [8, 96], strides = [1, 1]} : vector<8x128xf32> to vector<8x96xf32>
    %20 = arith.negf %19 : vector<8x96xf32>
    %21 = math.exp %20 : vector<8x96xf32>
    %cst_17 = arith.constant 1.000000e+00 : f32
    %22 = vector.broadcast %cst_17 : f32 to vector<8x96xf32>
    %23 = arith.addf %22, %21 : vector<8x96xf32>
    %24 = arith.divf %22, %23 : vector<8x96xf32>
    %25 = vector.extract_strided_slice %24 {offsets = [0, 0], sizes = [8, 32], strides = [1, 1]} : vector<8x96xf32> to vector<8x32xf32>
    %26 = vector.extract_strided_slice %24 {offsets = [0, 32], sizes = [8, 32], strides = [1, 1]} : vector<8x96xf32> to vector<8x32xf32>
    %27 = vector.extract_strided_slice %24 {offsets = [0, 64], sizes = [8, 32], strides = [1, 1]} : vector<8x96xf32> to vector<8x32xf32>
    %28 = vector.extract_strided_slice %18 {offsets = [0, 96], sizes = [8, 32], strides = [1, 1]} : vector<8x128xf32> to vector<8x32xf32>
    %29 = math.tanh %28 : vector<8x32xf32>
    %30 = arith.mulf %26, %11 : vector<8x32xf32>
    %31 = arith.mulf %25, %29 : vector<8x32xf32>
    %32 = arith.addf %30, %31 : vector<8x32xf32>
    %33 = math.tanh %32 : vector<8x32xf32>
    %34 = arith.mulf %27, %33 : vector<8x32xf32>
    %c1_i32 = arith.constant 1 : i32
    %c8_i32_18 = arith.constant 8 : i32
    %35 = arith.muli %c1_i32, %c8_i32_18 : i32
    %36 = tpu.assume_multiple %35, 8 : i32
    %37 = arith.index_cast %36 : i32 to index
    %c0_19 = arith.constant 0 : index
    %38 = vector.load %arg8[%37, %c0_19] : memref<32x128xf32, #tpu.memory_space<vmem>>, vector<8x128xf32>
    %c0_20 = arith.constant 0 : index
    %c0_21 = arith.constant 0 : index
    %39 = vector.load %arg3[%c0_20, %c0_21] : memref<32x128xf32, #tpu.memory_space<vmem>>, vector<32x128xf32>
    %cst_22 = arith.constant dense<0.000000e+00> : vector<8x128xf32>
    %40 = tpu.matmul %34, %39, %cst_22 {dimension_numbers = #tpu.dot_dimension_numbers<[1], [0], [0], [1], [0, 0, 1, 1], [], []>} : vector<8x32xf32>, vector<32x128xf32>, vector<8x128xf32> -> vector<8x128xf32>
    %41 = arith.addf %38, %40 : vector<8x128xf32>
    %42 = vector.extract_strided_slice %41 {offsets = [0, 0], sizes = [8, 96], strides = [1, 1]} : vector<8x128xf32> to vector<8x96xf32>
    %43 = arith.negf %42 : vector<8x96xf32>
    %44 = math.exp %43 : vector<8x96xf32>
    %cst_23 = arith.constant 1.000000e+00 : f32
    %45 = vector.broadcast %cst_23 : f32 to vector<8x96xf32>
    %46 = arith.addf %45, %44 : vector<8x96xf32>
    %47 = arith.divf %45, %46 : vector<8x96xf32>
    %48 = vector.extract_strided_slice %47 {offsets = [0, 0], sizes = [8, 32], strides = [1, 1]} : vector<8x96xf32> to vector<8x32xf32>
    %49 = vector.extract_strided_slice %47 {offsets = [0, 32], sizes = [8, 32], strides = [1, 1]} : vector<8x96xf32> to vector<8x32xf32>
    %50 = vector.extract_strided_slice %47 {offsets = [0, 64], sizes = [8, 32], strides = [1, 1]} : vector<8x96xf32> to vector<8x32xf32>
    %51 = vector.extract_strided_slice %41 {offsets = [0, 96], sizes = [8, 32], strides = [1, 1]} : vector<8x128xf32> to vector<8x32xf32>
    %52 = math.tanh %51 : vector<8x32xf32>
    %53 = arith.mulf %49, %32 : vector<8x32xf32>
    %54 = arith.mulf %48, %52 : vector<8x32xf32>
    %55 = arith.addf %53, %54 : vector<8x32xf32>
    %56 = math.tanh %55 : vector<8x32xf32>
    %57 = arith.mulf %50, %56 : vector<8x32xf32>
    %c2_i32 = arith.constant 2 : i32
    %c8_i32_24 = arith.constant 8 : i32
    %58 = arith.muli %c2_i32, %c8_i32_24 : i32
    %59 = tpu.assume_multiple %58, 8 : i32
    %60 = arith.index_cast %59 : i32 to index
    %c0_25 = arith.constant 0 : index
    %61 = vector.load %arg8[%60, %c0_25] : memref<32x128xf32, #tpu.memory_space<vmem>>, vector<8x128xf32>
    %c0_26 = arith.constant 0 : index
    %c0_27 = arith.constant 0 : index
    %62 = vector.load %arg3[%c0_26, %c0_27] : memref<32x128xf32, #tpu.memory_space<vmem>>, vector<32x128xf32>
    %cst_28 = arith.constant dense<0.000000e+00> : vector<8x128xf32>
    %63 = tpu.matmul %57, %62, %cst_28 {dimension_numbers = #tpu.dot_dimension_numbers<[1], [0], [0], [1], [0, 0, 1, 1], [], []>} : vector<8x32xf32>, vector<32x128xf32>, vector<8x128xf32> -> vector<8x128xf32>
    %64 = arith.addf %61, %63 : vector<8x128xf32>
    %65 = vector.extract_strided_slice %64 {offsets = [0, 0], sizes = [8, 96], strides = [1, 1]} : vector<8x128xf32> to vector<8x96xf32>
    %66 = arith.negf %65 : vector<8x96xf32>
    %67 = math.exp %66 : vector<8x96xf32>
    %cst_29 = arith.constant 1.000000e+00 : f32
    %68 = vector.broadcast %cst_29 : f32 to vector<8x96xf32>
    %69 = arith.addf %68, %67 : vector<8x96xf32>
    %70 = arith.divf %68, %69 : vector<8x96xf32>
    %71 = vector.extract_strided_slice %70 {offsets = [0, 0], sizes = [8, 32], strides = [1, 1]} : vector<8x96xf32> to vector<8x32xf32>
    %72 = vector.extract_strided_slice %70 {offsets = [0, 32], sizes = [8, 32], strides = [1, 1]} : vector<8x96xf32> to vector<8x32xf32>
    %73 = vector.extract_strided_slice %70 {offsets = [0, 64], sizes = [8, 32], strides = [1, 1]} : vector<8x96xf32> to vector<8x32xf32>
    %74 = vector.extract_strided_slice %64 {offsets = [0, 96], sizes = [8, 32], strides = [1, 1]} : vector<8x128xf32> to vector<8x32xf32>
    %75 = math.tanh %74 : vector<8x32xf32>
    %76 = arith.mulf %72, %55 : vector<8x32xf32>
    %77 = arith.mulf %71, %75 : vector<8x32xf32>
    %78 = arith.addf %76, %77 : vector<8x32xf32>
    %79 = math.tanh %78 : vector<8x32xf32>
    %80 = arith.mulf %73, %79 : vector<8x32xf32>
    %c3_i32 = arith.constant 3 : i32
    %c8_i32_30 = arith.constant 8 : i32
    %81 = arith.muli %c3_i32, %c8_i32_30 : i32
    %82 = tpu.assume_multiple %81, 8 : i32
    %83 = arith.index_cast %82 : i32 to index
    %c0_31 = arith.constant 0 : index
    %84 = vector.load %arg8[%83, %c0_31] : memref<32x128xf32, #tpu.memory_space<vmem>>, vector<8x128xf32>
    %c0_32 = arith.constant 0 : index
    %c0_33 = arith.constant 0 : index
    %85 = vector.load %arg3[%c0_32, %c0_33] : memref<32x128xf32, #tpu.memory_space<vmem>>, vector<32x128xf32>
    %cst_34 = arith.constant dense<0.000000e+00> : vector<8x128xf32>
    %86 = tpu.matmul %80, %85, %cst_34 {dimension_numbers = #tpu.dot_dimension_numbers<[1], [0], [0], [1], [0, 0, 1, 1], [], []>} : vector<8x32xf32>, vector<32x128xf32>, vector<8x128xf32> -> vector<8x128xf32>
    %87 = arith.addf %84, %86 : vector<8x128xf32>
    %88 = vector.extract_strided_slice %87 {offsets = [0, 0], sizes = [8, 96], strides = [1, 1]} : vector<8x128xf32> to vector<8x96xf32>
    %89 = arith.negf %88 : vector<8x96xf32>
    %90 = math.exp %89 : vector<8x96xf32>
    %cst_35 = arith.constant 1.000000e+00 : f32
    %91 = vector.broadcast %cst_35 : f32 to vector<8x96xf32>
    %92 = arith.addf %91, %90 : vector<8x96xf32>
    %93 = arith.divf %91, %92 : vector<8x96xf32>
    %94 = vector.extract_strided_slice %93 {offsets = [0, 0], sizes = [8, 32], strides = [1, 1]} : vector<8x96xf32> to vector<8x32xf32>
    %95 = vector.extract_strided_slice %93 {offsets = [0, 32], sizes = [8, 32], strides = [1, 1]} : vector<8x96xf32> to vector<8x32xf32>
    %96 = vector.extract_strided_slice %93 {offsets = [0, 64], sizes = [8, 32], strides = [1, 1]} : vector<8x96xf32> to vector<8x32xf32>
    %97 = vector.extract_strided_slice %87 {offsets = [0, 96], sizes = [8, 32], strides = [1, 1]} : vector<8x128xf32> to vector<8x32xf32>
    %98 = math.tanh %97 : vector<8x32xf32>
    %99 = arith.mulf %95, %78 : vector<8x32xf32>
    %100 = arith.mulf %94, %98 : vector<8x32xf32>
    %101 = arith.addf %99, %100 : vector<8x32xf32>
    %102 = math.tanh %101 : vector<8x32xf32>
    %103 = arith.mulf %96, %102 : vector<8x32xf32>
    %c4_i32 = arith.constant 4 : i32
    %c0_36 = arith.constant 0 : index
    %c0_37 = arith.constant 0 : index
    %104 = vector.load %arg9[%c0_36, %c0_37] : memref<8x32xf32, #tpu.memory_space<vmem>>, vector<8x32xf32>
    tpu.vector_store %arg9[%c0_36, %c0_37], %103 {strides = array<i32>} : memref<8x32xf32, #tpu.memory_space<vmem>>, vector<8x32xf32>,
    %c0_38 = arith.constant 0 : index
    %c0_39 = arith.constant 0 : index
    %105 = vector.load %arg10[%c0_38, %c0_39] : memref<8x32xf32, #tpu.memory_space<vmem>>, vector<8x32xf32>
    tpu.vector_store %arg10[%c0_38, %c0_39], %101 {strides = array<i32>} : memref<8x32xf32, #tpu.memory_space<vmem>>, vector<8x32xf32>,
    %c1_i32_40 = arith.constant 1 : i32
    %106 = arith.cmpi eq, %arg0, %c1_i32_40 : i32
    %107 = arith.extui %106 : i1 to i32
    %c0_i32_41 = arith.constant 0 : i32
    %108 = arith.cmpi ne, %107, %c0_i32_41 : i32
    scf.if %108 {
      %c0_42 = arith.constant 0 : index
      %c0_43 = arith.constant 0 : index
      %109 = vector.load %arg5[%c0_42, %c0_43] : memref<1x32xf32, #tpu.memory_space<vmem>>, vector<1x32xf32>
      %110 = vector.broadcast %109 : vector<1x32xf32> to vector<8x32xf32>
      %111 = arith.mulf %103, %110 : vector<8x32xf32>
      %cst_44 = arith.constant dense<0.000000e+00> : vector<8xf32>
      %112 = vector.multi_reduction <add>, %111, %cst_44 [1] : vector<8x32xf32> to vector<8xf32>
      %113 = vector.shape_cast %112 : vector<8xf32> to vector<8x1xf32>
      %c0_45 = arith.constant 0 : index
      %114 = memref.load %arg6[%c0_45] : memref<1xf32, #tpu.memory_space<smem>>
      %115 = vector.broadcast %114 : f32 to vector<8x1xf32>
      %116 = arith.addf %113, %115 : vector<8x1xf32>
      %117 = arith.negf %116 : vector<8x1xf32>
      %118 = math.exp %117 : vector<8x1xf32>
      %cst_46 = arith.constant 1.000000e+00 : f32
      %119 = vector.broadcast %cst_46 : f32 to vector<8x1xf32>
      %120 = arith.addf %119, %118 : vector<8x1xf32>
      %121 = arith.divf %119, %120 : vector<8x1xf32>
      %c0_47 = arith.constant 0 : index
      %c0_48 = arith.constant 0 : index
      %122 = vector.load %arg7[%c0_47, %c0_48] : memref<8x1xf32, #tpu.memory_space<vmem>>, vector<8x1xf32>
      tpu.vector_store %arg7[%c0_47, %c0_48], %121 {strides = array<i32>} : memref<8x1xf32, #tpu.memory_space<vmem>>, vector<8x1xf32>,
    } else {
    }
    return
  }
  func.func @transform_0(%arg0: i32) -> (i32, i32) {
    %c0_i32 = arith.constant 0 : i32
    %c0_i32_0 = arith.constant 0 : i32
    return %arg0, %c0_i32 : i32, i32
  }
  func.func @transform_1(%arg0: i32) -> (i32, i32) {
    %c0_i32 = arith.constant 0 : i32
    %c0_i32_0 = arith.constant 0 : i32
    %c0_i32_1 = arith.constant 0 : i32
    return %c0_i32, %c0_i32_0 : i32, i32
  }
  func.func @transform_2(%arg0: i32) -> (i32, i32) {
    %c0_i32 = arith.constant 0 : i32
    %c0_i32_0 = arith.constant 0 : i32
    %c0_i32_1 = arith.constant 0 : i32
    return %c0_i32, %c0_i32_0 : i32, i32
  }
  func.func @transform_3(%arg0: i32) -> (i32, i32) {
    %c0_i32 = arith.constant 0 : i32
    %c0_i32_0 = arith.constant 0 : i32
    %c0_i32_1 = arith.constant 0 : i32
    return %c0_i32, %c0_i32_0 : i32, i32
  }
  func.func @transform_4(%arg0: i32) -> (i32, i32) {
    %c0_i32 = arith.constant 0 : i32
    %c0_i32_0 = arith.constant 0 : i32
    %c0_i32_1 = arith.constant 0 : i32
    return %c0_i32, %c0_i32_0 : i32, i32
  }
  func.func @transform_5(%arg0: i32) -> i32 {
    %c0_i32 = arith.constant 0 : i32
    %c0_i32_0 = arith.constant 0 : i32
    return %c0_i32 : i32
  }
  func.func @transform_6(%arg0: i32) -> (i32, i32) {
    %c0_i32 = arith.constant 0 : i32
    %c0_i32_0 = arith.constant 0 : i32
    %c0_i32_1 = arith.constant 0 : i32
    return %c0_i32, %c0_i32_0 : i32, i32
  }
}

</mosaic_0001>

<bundles_post_ra>
// kernel: tpu_custom_call.1
= control target key start
LH: loop header
LB: loop body
LE: loop exit
PB: predicated region body
PF: predicated region fallthrough
CT: control target
= control target key end

     0   :  { %s781_s23 = smov 0   ;;  %s867_s0 = inlined_call_operand.vmem [shape: f32[64,4], index: 0, kind: input, shape index: {}]   ;;  %s868_s1 = inlined_call_operand.vmem [shape: f32[4,128], index: 1, kind: input, shape index: {}]   ;;  %s869_s2 = inlined_call_operand.vmem [shape: f32[32,128], index: 2, kind: input, shape index: {}]   ;;  %s870_s3 = inlined_call_operand.vmem [shape: f32[1,128], index: 3, kind: input, shape index: {}]   ;;  %s871_s4 = inlined_call_operand.vmem [shape: f32[1,32], index: 4, kind: input, shape index: {}]   ;;  %s872_s5 = inlined_call_operand.<no memory space> [shape: f32[1], index: 5, kind: input, shape index: {}]   ;;  %s873_s6 = inlined_call_operand.vmem [shape: f32[8,1], index: 6, kind: output, shape index: {}]  }
   0x1   :  { %11 = sst [smem:[#allocation5]] %s872_s5 }
   0x2 LB: > { %s787_s24 = sadd.s32 4294967295, %s736_s23   ;;  %p657_p0 = scmp.ge.s32.totalorder %s736_s23, 1  ;;  %s736_s23 = sphi %s781_s23, %s17_s23  }
   0x3   : > { %p209_p1 = scmp.lt.s32.totalorder %s736_s23, 3 }
   0x5   : > { %p210_p2 = pnand %p657_p0, %p209_p1 }
   0x6   : > { %s658_s25 = sshll.u32 (!%p210_p2), %s787_s24, 2  ;;  %p660_p4 = scmp.ne.s32.totalorder (!%p210_p2), %s787_s24, 0 }
   0x7   : > { %213 = sbr.rel (%p210_p2) target bundleno = 2734 (0xaae), region = 44  ;;  %p235_p3 = scmp.lt.s32.totalorder (!%p210_p2), %s658_s25, 7 }
   0xc   : > { %s875_s25 = smov (!%p235_p3, %s658_s25), 7  ;;  %243 = sbr.rel (%p660_p4) target bundleno = 20 (0x14), region = 48 }
   0xd   : > { %s659_s5 = sshll.u32 %s875_s25, 3 }
   0xe   : > { %s795_s28 = scalar_lea.vmem %s867_s0, %s659_s5 }
  0x11   : > { %vm244_vm0 = vcmask 261120   ;;  %v738_v0 = vmov 0.0  }
  0x12   : > { %245 = vst.msk [vmem:[#allocation3] sm:$0xff] %vm244_vm0, %v738_v0 }
  0x13   : > { %246 = vst.msk [vmem:[#allocation4] sm:$0xff] %vm244_vm0, %v738_v0 }
  0x14 PF: > { %v312_v1 = vld [vmem:[%s869_s2 + $0x18] sm:$0xff]  ;;  %v311_v2 = vld [vmem:[%s869_s2 + $0x10] sm:$0xff]  ;;  %v251_v3 = vld [vmem:[%s868_s1] sm:$0xf]  ;;  %vm269_vm1 = vcmask 1043456   ;;  %vm256_vm2 = vcmask 31744  }
  0x15   : > { %329 = vmatpush.msra.mxu1 %v312_v1  ;;  %661 = vmatpush.msk.msra.mxu0 %vm269_vm1, %v251_v3  ;;  %v247_v4 = vld [vmem:[%s795_s28] sm:$0xff]  ;;  %v310_v5 = vld [vmem:[%s869_s2 + $0x8] sm:$0xff]  ;;  %vm313_vm3 = vcmask 261120   ;;  %s739_s17 = smov 32   ;;  %v250_v35 = vld [vmem:[%s795_s28 + $0x18] sm:$0xff]  ;;  %s740_s18 = smov 64  }
  0x16   : > { %662 = vmatmul.msk.f32.vlgmr.msra.gmra.mxu0 %vm256_vm2, %v247_v4  ;;  %678 = vmatpush.msk.msra.mxu2 %vm269_vm1, %v251_v3  ;;  %v309_v6 = vld [vmem:[%s869_s2] sm:$0xff]  ;;  %v248_v38 = vld [vmem:[%s795_s28 + $0x8] sm:$0xff]  ;;  %v249_v3 = vld [vmem:[%s795_s28 + $0x10] sm:$0xff]  ;;  %s741_s19 = smov 96   ;;  %p674_p5 = scmp.ne.s32.totalorder %s787_s24, 1 }
  0x17   : > { %330 = vmatpush.msra.mxu1 %v311_v2  ;;  %463 = vmatpush.msra.mxu3 %v312_v1  ;;  %v819_v8 = vld [vmem:[%s870_s3] ss:$0 sm:$0xff]  ;;  %s742_s22 = smov (!%p674_p5), 64   ;;  %s602_s25 = sld [smem:[#allocation5]] (!%p674_p5) }
  0x18   : > { %398 = vmatpush.msrb.mxu2 %v312_v1 }
  0x19   : > { %331 = vmatpush.msra.mxu1 %v310_v5  ;;  %v306_v7 = vld [vmem:[#allocation3] sm:$0xff]  ;;  %464 = vmatpush.msra.mxu3 %v311_v2 }
  0x1a   : > { %399 = vmatpush.msrb.mxu2 %v311_v2  ;;  %v307_v14 = vld [vmem:[#allocation4] sm:$0xff] }
  0x1b   : > { %332 = vmatpush.msra.mxu1 %v309_v6  ;;  %465 = vmatpush.msra.mxu3 %v310_v5 }
  0x1c   : > { %400 = vmatpush.msrb.mxu2 %v310_v5  ;;  %666 = vmatmul.msk.f32.vlgmr.msra.gmra.mxu1 %vm313_vm3, %v306_v7 }
  0x1d   : > { %528 = vmatpush.msrb.mxu1 %v312_v1  ;;  %466 = vmatpush.msra.mxu3 %v309_v6 }
  0x1e   : > { %401 = vmatpush.msrb.mxu2 %v309_v6  ;;  %663 = vmatmul.msk.f32.gmra.mxu0 %vm256_vm2, %v248_v38 }
  0x1f   : > { %529 = vmatpush.msrb.mxu1 %v311_v2  ;;  %665 = vmatmul.msk.f32.vlgmr.msra.gmra.mxu2 %vm256_vm2, %v250_v35 }
  0x21   : > { %530 = vmatpush.msrb.mxu1 %v310_v5 }
  0x23   : > { %531 = vmatpush.msrb.mxu1 %v309_v6 }
  0x26   : > { %664 = vmatmul.msk.f32.gmra.mxu0 %vm256_vm2, %v249_v3 }
  0x93   : > { %v290_v9 = vpop.f32.mrf.mxu0 }
  0x94   : > { %v291_v10 = vadd.f32 %v819_v8, %v290_v9 }
  0x99   : > { %v334_v11 = vpop.f32.mrf.mxu1 }
  0x9a   : > { %v337_v12 = vadd.f32 %v334_v11, %v291_v10 }
  0x9b   : > { %v293_v41 = vpop.f32.mrf.mxu0 }
  0x9c   : > { %693 = vtanh.f32 %v337_v12  ;;  %v667_v15 = vmul.f32 -1.442695, %v337_v12  ;;  %v294_v42 = vadd.f32 %v819_v8, %v293_v41 }
  0x9e   : > { %695 = vpow2.f32 %v667_v15 }
  0xa2   : > { %v694_v13 = vpop.eup %693  ;;  %v832_v40 = vpop.f32.mrf.mxu2 }
  0xa3   : > { %364 = vrot.lane.b32.xlu0 %v694_v13, %s739_s17  ;;  %v296_v5 = vpop.f32.mrf.mxu0 }
  0xa4   : > { %v696_v16 = vpop.eup %695  ;;  %v297_v6 = vadd.f32 %v819_v8, %v296_v5 }
  0xa5   : > { %v341_v17 = vadd.f32 1.0, %v696_v16 }
  0xa7   : > { %697 = vrcp.f32 %v341_v17  ;;  %v353_v23 = vand.u32 2147483648, %v341_v17  ;;  %vm347_vm5 = vweird.f32 %v341_v17  ;;  %v351_v24 = vand.u32 2147483647, %v341_v17 }
  0xa9   : > { %v354_v26 = vor.u32 1.1754944e-38, %v353_v23  ;;  %vm352_vm7 = vcmp.eq.f32.partialorder %v351_v24, 8.507059e+37 }
  0xab   : > { %359 = vrot.lane.b32.xlu0 %v307_v14, %s739_s17 }
  0xad   : > { %v698_v18 = vpop.eup %697 }
  0xae   : > { %v343_v19 = vmul.f32 %v698_v18, %v341_v17  ;;  %vm348_vm4 = vweird.f32 %v698_v18 }
  0xaf   : > { %vm349_vm6 = vmor %vm347_vm5, %vm348_vm4 }
  0xb0   : > { %v344_v20 = vsub.f32 1.0, %v343_v19 }
  0xb2   : > { %v345_v21 = vmul.f32 %v698_v18, %v344_v20 }
  0xb4   : > { %v346_v22 = vadd.f32 %v698_v18, %v345_v21 }
  0xb6   : > { %v350_v25 = vsel %vm349_vm6, %v698_v18, %v346_v22 }
  0xb7   : > { %v355_v28 = vsel %vm352_vm7, %v354_v26, %v350_v25 }
 0x115   : > { %v365_v27 = vpop.permute.xlu0 %364 }
 0x116   : > { %v367_v29 = vmul.f32 %v365_v27, %v355_v28 }
 0x118   : > { %369 = vrot.lane.b32.xlu1 %v367_v29, %s739_s17 }
 0x11d   : > { %v360_v30 = vpop.permute.xlu0 %359 }
 0x11e   : > { %v362_v31 = vmul.f32 %v360_v30, %v355_v28 }
 0x18a   : > { %v370_v32 = vpop.permute.xlu1 %369 }
 0x18b   : > { %v372_v33 = vadd.f32 %v370_v32, %v362_v31 }
 0x18d   : > { %699 = vtanh.f32 %v372_v33 }
 0x193   : > { %v700_v34 = vpop.eup %699 }
 0x194   : > { %375 = vrot.lane.b32.xlu1 %v700_v34, %s739_s17 }
 0x206   : > { %v376_v36 = vpop.permute.xlu1 %375 }
 0x207   : > { %v378_v37 = vmul.f32 %v376_v36, %v355_v28 }
 0x209   : > { %382 = vrot.lane.b32.xlu2 %v378_v37, %s740_s18 }
 0x263   : > { %v383_v39 = vpop.permute.xlu2 %382 }
 0x264   : > { %668 = vmatmul.msk.f32.vlgmr.msrb.gmra.mxu2 %vm313_vm3, %v383_v39 }
 0x2e7   : > { %v403_v43 = vpop.f32.mrf.mxu2 }
 0x2e8   : > { %v406_v44 = vadd.f32 %v403_v43, %v294_v42 }
 0x2ea   : > { %701 = vtanh.f32 %v406_v44  ;;  %v669_v46 = vmul.f32 -1.442695, %v406_v44 }
 0x2ec   : > { %703 = vpow2.f32 %v669_v46 }
 0x2f0   : > { %v702_v45 = vpop.eup %701 }
 0x2f1   : > { %429 = vrot.lane.b32.xlu2 %v702_v45, %s739_s17 }
 0x2f2   : > { %v704_v47 = vpop.eup %703 }
 0x2f3   : > { %v410_v48 = vadd.f32 1.0, %v704_v47 }
 0x2f5   : > { %705 = vrcp.f32 %v410_v48  ;;  %v422_v54 = vand.u32 2147483648, %v410_v48  ;;  %vm416_vm9 = vweird.f32 %v410_v48  ;;  %v420_v55 = vand.u32 2147483647, %v410_v48 }
 0x2f7   : > { %v423_v57 = vor.u32 1.1754944e-38, %v422_v54  ;;  %vm421_vm11 = vcmp.eq.f32.partialorder %v420_v55, 8.507059e+37 }
 0x2fb   : > { %v706_v49 = vpop.eup %705 }
 0x2fc   : > { %v412_v50 = vmul.f32 %v706_v49, %v410_v48  ;;  %vm417_vm8 = vweird.f32 %v706_v49 }
 0x2fd   : > { %vm418_vm10 = vmor %vm416_vm9, %vm417_vm8 }
 0x2fe   : > { %v413_v51 = vsub.f32 1.0, %v412_v50 }
 0x300   : > { %v414_v52 = vmul.f32 %v706_v49, %v413_v51 }
 0x302   : > { %v415_v53 = vadd.f32 %v706_v49, %v414_v52 }
 0x304   : > { %v419_v56 = vsel %vm418_vm10, %v706_v49, %v415_v53 }
 0x305   : > { %v424_v59 = vsel %vm421_vm11, %v423_v57, %v419_v56 }
 0x306   : > { %v427_v61 = vmul.f32 %v424_v59, %v372_v33  ;;  %v300_v33 = vadd.f32 %v819_v8, %v832_v40 }
 0x34b   : > { %v430_v58 = vpop.permute.xlu2 %429 }
 0x34c   : > { %v432_v60 = vmul.f32 %v430_v58, %v424_v59 }
 0x34e   : > { %434 = vrot.lane.b32.xlu0 %v432_v60, %s739_s17 }
 0x3c0   : > { %v435_v62 = vpop.permute.xlu0 %434 }
 0x3c1   : > { %v437_v63 = vadd.f32 %v435_v62, %v427_v61 }
 0x3c3   : > { %707 = vtanh.f32 %v437_v63 }
 0x3c9   : > { %v708_v0 = vpop.eup %707 }
 0x3ca   : > { %440 = vrot.lane.b32.xlu1 %v708_v0, %s739_s17 }
 0x43c   : > { %v441_v1 = vpop.permute.xlu1 %440 }
 0x43d   : > { %v443_v2 = vmul.f32 %v441_v1, %v424_v59 }
 0x43f   : > { %447 = vrot.lane.b32.xlu2 %v443_v2, %s740_s18 }
 0x499   : > { %v448_v4 = vpop.permute.xlu2 %447 }
 0x49a   : > { %670 = vmatmul.msk.f32.vlgmr.msra.gmra.mxu3 %vm313_vm3, %v448_v4 }
 0x51d   : > { %v468_v7 = vpop.f32.mrf.mxu3 }
 0x51e   : > { %v471_v9 = vadd.f32 %v468_v7, %v297_v6 }
 0x520   : > { %709 = vtanh.f32 %v471_v9  ;;  %v671_v11 = vmul.f32 -1.442695, %v471_v9 }
 0x522   : > { %711 = vpow2.f32 %v671_v11 }
 0x526   : > { %v710_v10 = vpop.eup %709 }
 0x527   : > { %494 = vrot.lane.b32.xlu0 %v710_v10, %s739_s17 }
 0x528   : > { %v712_v12 = vpop.eup %711 }
 0x529   : > { %v475_v13 = vadd.f32 1.0, %v712_v12 }
 0x52b   : > { %713 = vrcp.f32 %v475_v13  ;;  %v487_v19 = vand.u32 2147483648, %v475_v13  ;;  %vm481_vm13 = vweird.f32 %v475_v13  ;;  %v485_v20 = vand.u32 2147483647, %v475_v13 }
 0x52d   : > { %v488_v22 = vor.u32 1.1754944e-38, %v487_v19  ;;  %vm486_vm15 = vcmp.eq.f32.partialorder %v485_v20, 8.507059e+37 }
 0x531   : > { %v714_v14 = vpop.eup %713 }
 0x532   : > { %v477_v15 = vmul.f32 %v714_v14, %v475_v13  ;;  %vm482_vm12 = vweird.f32 %v714_v14 }
 0x533   : > { %vm483_vm14 = vmor %vm481_vm13, %vm482_vm12 }
 0x534   : > { %v478_v16 = vsub.f32 1.0, %v477_v15 }
 0x536   : > { %v479_v17 = vmul.f32 %v714_v14, %v478_v16 }
 0x538   : > { %v480_v18 = vadd.f32 %v714_v14, %v479_v17 }
 0x53a   : > { %v484_v21 = vsel %vm483_vm14, %v714_v14, %v480_v18 }
 0x53b   : > { %v489_v24 = vsel %vm486_vm15, %v488_v22, %v484_v21 }
 0x53c   : > { %v492_v26 = vmul.f32 %v489_v24, %v437_v63 }
 0x599   : > { %v495_v23 = vpop.permute.xlu0 %494 }
 0x59a   : > { %v497_v25 = vmul.f32 %v495_v23, %v489_v24 }
 0x59c   : > { %499 = vrot.lane.b32.xlu1 %v497_v25, %s739_s17 }
 0x60e   : > { %v500_v27 = vpop.permute.xlu1 %499 }
 0x60f   : > { %v502_v28 = vadd.f32 %v500_v27, %v492_v26 }
 0x611   : > { %715 = vtanh.f32 %v502_v28 }
 0x617   : > { %v716_v29 = vpop.eup %715 }
 0x618   : > { %505 = vrot.lane.b32.xlu2 %v716_v29, %s739_s17 }
 0x672   : > { %v506_v30 = vpop.permute.xlu2 %505 }
 0x673   : > { %v508_v31 = vmul.f32 %v506_v30, %v489_v24 }
 0x675   : > { %512 = vrot.lane.b32.xlu0 %v508_v31, %s740_s18 }
 0x6e7   : > { %v513_v32 = vpop.permute.xlu0 %512 }
 0x6e8   : > { %672 = vmatmul.msk.f32.vlgmr.msrb.gmra.mxu1 %vm313_vm3, %v513_v32 }
 0x765   : > { %v533_v34 = vpop.f32.mrf.mxu1 }
 0x766   : > { %v536_v35 = vadd.f32 %v533_v34, %v300_v33 }
 0x768   : > { %717 = vtanh.f32 %v536_v35  ;;  %v673_v37 = vmul.f32 -1.442695, %v536_v35 }
 0x76a   : > { %719 = vpow2.f32 %v673_v37 }
 0x76e   : > { %v718_v36 = vpop.eup %717 }
 0x76f   : > { %559 = vrot.lane.b32.xlu1 %v718_v36, %s739_s17 }
 0x770   : > { %v720_v38 = vpop.eup %719 }
 0x771   : > { %v540_v39 = vadd.f32 1.0, %v720_v38 }
 0x773   : > { %721 = vrcp.f32 %v540_v39  ;;  %v552_v46 = vand.u32 2147483648, %v540_v39  ;;  %vm546_vm1 = vweird.f32 %v540_v39  ;;  %v550_v8 = vand.u32 2147483647, %v540_v39 }
 0x775   : > { %v553_v47 = vor.u32 1.1754944e-38, %v552_v46  ;;  %vm551_vm4 = vcmp.eq.f32.partialorder %v550_v8, 8.507059e+37 }
 0x779   : > { %v722_v41 = vpop.eup %721 }
 0x77a   : > { %v542_v42 = vmul.f32 %v722_v41, %v540_v39  ;;  %vm547_vm0 = vweird.f32 %v722_v41 }
 0x77b   : > { %vm548_vm2 = vmor %vm546_vm1, %vm547_vm0 }
 0x77c   : > { %v543_v43 = vsub.f32 1.0, %v542_v42 }
 0x77e   : > { %v544_v44 = vmul.f32 %v722_v41, %v543_v43 }
 0x780   : > { %v545_v45 = vadd.f32 %v722_v41, %v544_v44 }
 0x782   : > { %v549_v40 = vsel %vm548_vm2, %v722_v41, %v545_v45 }
 0x783   : > { %v554_v49 = vsel %vm551_vm4, %v553_v47, %v549_v40 }
 0x784   : > { %v557_v51 = vmul.f32 %v554_v49, %v502_v28 }
 0x7e1   : > { %v560_v48 = vpop.permute.xlu1 %559 }
 0x7e2   : > { %v562_v50 = vmul.f32 %v560_v48, %v554_v49 }
 0x7e4   : > { %564 = vrot.lane.b32.xlu2 %v562_v50, %s739_s17 }
 0x83e   : > { %v565_v52 = vpop.permute.xlu2 %564 }
 0x83f   : > { %v567_v53 = vadd.f32 %v565_v52, %v557_v51 }
 0x841   : > { %723 = vtanh.f32 %v567_v53  ;;  %580 = vrot.lane.b32.xlu2 %v567_v53, %s741_s19 }
 0x847   : > { %v724_v54 = vpop.eup %723 }
 0x848   : > { %570 = vrot.lane.b32.xlu0 %v724_v54, %s739_s17 }
 0x89b   : > { %v581_v55 = vpop.permute.xlu2 %580 }
 0x89c   : > { %583 = vst.msk [vmem:[#allocation4] sm:$0xff] %vm313_vm3, %v581_v55 }
 0x8ba   : > { %v571_v56 = vpop.permute.xlu0 %570 }
 0x8bb   : > { %v573_v57 = vmul.f32 %v571_v56, %v554_v49 }
 0x8bd   : > { %575 = vrot.lane.b32.xlu1 %v573_v57, %s740_s18 }
 0x92c   : > { %587 = sbr.rel (%p674_p5) target bundleno = 2734 (0xaae), region = 52 }
 0x92f   : > { %v576_v58 = vpop.permute.xlu1 %575 }
 0x930   : > { %578 = vst.msk [vmem:[#allocation3] sm:$0xff] %vm313_vm3, %v576_v58 }
 0x931   : > { %v725_v59 = vld [vmem:[%s871_s4] ss:$0 sm:$0xff]  ;;  %v603_v0 = vstv %s602_s25 }
 0x932   : > { %591 = vrot.lane.b32.xlu0 %v725_v59, %s742_s22 }
 0x9a4   : > { %v592_v60 = vpop.permute.xlu0 %591 }
 0x9a5   : > { %v594_v61 = vmul.f32 %v592_v60, %v573_v57 }
 0x9a7   : > { %596 = vrot.lane.b32.xlu0 %v594_v61, %s742_s22 }
 0xa19   : > { %v597_v62 = vpop.permute.xlu0 %596 }
 0xa1a   : > { %v599_v63 = vsel %vm313_vm3, %v597_v62, 0.0  ;;  %vm624_vm3 = vcmask 7168  }
 0xa1b   : > { %600 = vadd.xlane.f32.xlu1 %v599_v63 }
 0xa8e   : > { %v601_v1 = vpop.xlane.xlu1 %600 }
 0xa8f   : > { %v604_v2 = vadd.f32 %v603_v0, %v601_v1 }
 0xa91   : > { %v675_v3 = vmul.f32 -1.442695, %v604_v2 }
 0xa93   : > { %726 = vpow2.f32 %v675_v3 }
 0xa99   : > { %v727_v4 = vpop.eup %726 }
 0xa9a   : > { %v608_v5 = vadd.f32 1.0, %v727_v4 }
 0xa9c   : > { %728 = vrcp.f32 %v608_v5  ;;  %v620_v10 = vand.u32 2147483648, %v608_v5  ;;  %v618_v12 = vand.u32 2147483647, %v608_v5  ;;  %vm614_vm6 = vweird.f32 %v608_v5 }
 0xa9e   : > { %v621_v14 = vor.u32 1.1754944e-38, %v620_v10  ;;  %vm619_vm8 = vcmp.eq.f32.partialorder %v618_v12, 8.507059e+37 }
 0xaa2   : > { %v729_v6 = vpop.eup %728 }
 0xaa3   : > { %v610_v7 = vmul.f32 %v729_v6, %v608_v5  ;;  %vm615_vm5 = vweird.f32 %v729_v6 }
 0xaa4   : > { %vm616_vm7 = vmor %vm614_vm6, %vm615_vm5 }
 0xaa5   : > { %v611_v9 = vsub.f32 1.0, %v610_v7 }
 0xaa7   : > { %v612_v11 = vmul.f32 %v729_v6, %v611_v9 }
 0xaa9   : > { %v613_v13 = vadd.f32 %v729_v6, %v612_v11 }
 0xaab   : > { %v617_v15 = vsel %vm616_vm7, %v729_v6, %v613_v13 }
 0xaac   : > { %v622_v16 = vsel %vm619_vm8, %v621_v14, %v617_v15 }
 0xaad   : > { %625 = vst.msk [vmem:[%s873_s6] sm:$0xff] %vm624_vm3, %v622_v16 }
 0xaae PF: > { %s17_s23 = sadd.s32 1, %s736_s23  }
 0xaaf   : > { %p14_p6 = scmp.ge.s32.totalorder %s17_s23, 4  }
 0xab1   :  { %16 = sbr.rel (!%p14_p6) target bundleno = 2 (0x2), region = 81 }

</bundles_post_ra>
